<compile_context>
chip_gen: v5e
topology: v5e:2x2
jax: 0.10.0
libtpu: 0.0.40
codegen_flags: <defaults>
</compile_context>

<pallas_src>
import functools

import jax
import jax.numpy as jnp
from jax.experimental import pallas as pl
from jax.experimental.pallas import tpu as pltpu


# ----------------------------------------------------------------------------
# Default path: identity that materializes a fresh output buffer.
# ----------------------------------------------------------------------------
def _copy_kernel(x_ref, o_ref):
    o_ref[...] = x_ref[...]


def expnet_forward(x: jax.Array) -> jax.Array:
    """ExpNet forward pass (identity), producing a new buffer."""
    total = x.size
    lane = None
    for cand in (2048, 1024, 512, 256, 128):
        if total % cand == 0:
            lane = cand
            break

    if lane is None:
        # TODO(synk): element counts not divisible by 128 use a single
        # full-extent block (fine for small tensors) instead of a padded copy.
        flat = x.reshape(1, total)
        y = pl.pallas_call(
            _copy_kernel,
            out_shape=jax.ShapeDtypeStruct((1, total), x.dtype),
        )(flat)
        return y.reshape(x.shape)

    rows = total // lane
    bytes_per_row = lane * x.dtype.itemsize
    # ~4 MiB blocks: double-buffered in+out ~= 16 MiB, safely under the 32 MiB
    # scoped-VMEM default on every generation (v5e/v6e/v7x).
    target_block_bytes = 4 * 1024 * 1024
    max_rows_per_block = max(8, ((target_block_bytes // bytes_per_row) // 8) * 8)

    if rows <= max_rows_per_block:
        block_rows = rows  # full extent along the sublane dim: always legal
    else:
        block_rows = max_rows_per_block  # multiple of 8; partial tail block ok

    x2 = x.reshape(rows, lane)
    y2 = pl.pallas_call(
        _copy_kernel,
        out_shape=jax.ShapeDtypeStruct((rows, lane), x.dtype),
        grid=(pl.cdiv(rows, block_rows),),
        in_specs=[pl.BlockSpec((block_rows, lane), lambda i: (i, 0))],
        out_specs=pl.BlockSpec((block_rows, lane), lambda i: (i, 0)),
        compiler_params=pltpu.CompilerParams(
            dimension_semantics=("parallel",),
        ),
    )(x2)
    return y2.reshape(x.shape)


# ----------------------------------------------------------------------------
# Zero-copy path: output aliases the (donated) input; no data movement at all.
# ----------------------------------------------------------------------------
def _identity_alias_kernel(x_hbm_ref, o_hbm_ref):
    # Output buffer aliases the input buffer (input_output_aliases={0: 0});
    # the result is already in place, so there is nothing to DMA or compute.
    del x_hbm_ref, o_hbm_ref


@functools.partial(jax.jit, donate_argnums=0)
def expnet_forward_inplace(x: jax.Array) -> jax.Array:
    """ExpNet forward pass (identity), zero-copy: output aliases donated input."""
    return pl.pallas_call(
        _identity_alias_kernel,
        out_shape=jax.ShapeDtypeStruct(x.shape, x.dtype),
        in_specs=[pl.BlockSpec(memory_space=pl.ANY)],
        out_specs=pl.BlockSpec(memory_space=pl.ANY),
        input_output_aliases={0: 0},
    )(x)


if __name__ == "__main__":
    key = jax.random.PRNGKey(0)
    x = jax.random.normal(key, (2, 4, 16, 16), dtype=jnp.float32)
    x_host = jax.device_get(x)  # reference values, independent of any aliasing

    # Default materializing copy path.
    y = expnet_forward(x)
    jax.block_until_ready(y)
    assert y.shape == x_host.shape and y.dtype == x.dtype
    assert bool(jnp.allclose(y, x_host)), "copy identity forward mismatch"

    # Zero-copy aliased path (donates x; must run after the copy path used x).
    y2 = expnet_forward_inplace(x)
    jax.block_until_ready(y2)
    assert y2.shape == x_host.shape and y2.dtype == x.dtype
    assert bool(jnp.allclose(y2, x_host)), "aliased identity forward mismatch"

    print("KERNEL_OK")
</pallas_src>

<mosaic_0001>
module attributes {stable_mosaic.version = 11 : i64} {
  func.func @_copy_kernel(%arg0: i32, %arg1: memref<1x2048xf32, #tpu.memory_space<vmem>>, %arg2: memref<1x2048xf32, #tpu.memory_space<vmem>>) attributes {dimension_semantics = [#tpu.dimension_semantics<parallel>], iteration_bounds = array<i64: 1>, scalar_prefetch = 0 : i64, scratch_operands = 0 : i64, tpu.core_type = #tpu.core_type<tc>, window_params = [{transform_indices = @transform_0, window_bounds = array<i64: 1, 2048>}, {transform_indices = @transform_1, window_bounds = array<i64: 1, 2048>}]} {
    %c0 = arith.constant 0 : index
    %c0_0 = arith.constant 0 : index
    %0 = vector.load %arg1[%c0, %c0_0] : memref<1x2048xf32, #tpu.memory_space<vmem>>, vector<1x2048xf32>
    %c0_1 = arith.constant 0 : index
    %c0_2 = arith.constant 0 : index
    %1 = vector.load %arg2[%c0_1, %c0_2] : memref<1x2048xf32, #tpu.memory_space<vmem>>, vector<1x2048xf32>
    tpu.vector_store %arg2[%c0_1, %c0_2], %0 {strides = array<i32>} : memref<1x2048xf32, #tpu.memory_space<vmem>>, vector<1x2048xf32>,
    return
  }
  func.func @transform_0(%arg0: i32) -> (i32, i32) {
    %c0_i32 = arith.constant 0 : i32
    %c0_i32_0 = arith.constant 0 : i32
    return %arg0, %c0_i32 : i32, i32
  }
  func.func @transform_1(%arg0: i32) -> (i32, i32) {
    %c0_i32 = arith.constant 0 : i32
    %c0_i32_0 = arith.constant 0 : i32
    return %arg0, %c0_i32 : i32, i32
  }
}

</mosaic_0001>

<bundles_post_ra>
// kernel: tpu_custom_call.1
= control target key start
LH: loop header
LB: loop body
LE: loop exit
PB: predicated region body
PF: predicated region fallthrough
CT: control target
= control target key end

     0   :  { %6 = vsyncpa [#allocation3], 0  ;;  %s116_s0 = inlined_call_operand.hbm [shape: f32[1,2048], index: 0, kind: input, shape index: {}]   ;;  %s117_s1 = inlined_call_operand.hbm [shape: f32[1,2048], index: 1, kind: output, shape index: {}]  }
   0x1   :  { %7 = vsyncpa [#allocation4], 0  ;;  %s13_s8 = sshll.u32 %s116_s0, 4  ;;  %s98_s9 = smov [#allocation2]   ;;  %s14_s8 = int_to_ptr.hbm [resolvable:$true] %s13_s8 }
   0x2   :  { %s15_s10 = sshll.u32 %s98_s9, 4  ;;  %s16_s10 = int_to_ptr.vmem [resolvable:$true] %s15_s10 }
   0x3   :  { %18 = dma.hbm_to_vmem [thread:$0]  %s14_s8, 256, %s16_s10, [#allocation3]  }
   0x4   :  { %94 = dma.done.wait [#allocation3], 256  }
   0x5   :  { %95 = vsyncadd [#allocation3], 4294967040  ;;  %s99_s11 = smov [#allocation5]   ;;  %s34_s15 = sshll.u32 %s117_s1, 4  ;;  %v23_v0 = vld [vmem:[#allocation2] sm:$0xff]  ;;  %v24_v1 = vld [vmem:[#allocation2 + $0x8] sm:$0xff]  ;;  %s35_s15 = int_to_ptr.hbm [resolvable:$true] %s34_s15 }
   0x6   :  { %s32_s12 = sshll.u32 %s99_s11, 4  ;;  %25 = vst [vmem:[#allocation5] sm:$0xff] %v23_v0  ;;  %s33_s12 = int_to_ptr.vmem [resolvable:$true] %s32_s12 }
   0x7   :  { %26 = vst [vmem:[#allocation5 + $0x8] sm:$0xff] %v24_v1 }
   0x8   :  { %37 = dma.vmem_to_hbm [thread:$0]  %s33_s12, 256, %s35_s15, [#allocation4]  }
   0x9   :  { %96 = dma.done.wait [#allocation4], 256  }
   0xa   :  { %97 = vsyncadd [#allocation4], 4294967040 }
   0xb   :  { %42 = vsyncpa [#allocation3], 1 }
   0xc   :  { %43 = vsyncpa [#allocation4], 1 }

</bundles_post_ra>
